<compile_context>
chip_gen: v7x
topology: tpu7x:2x2x1
jax: 0.10.0
libtpu: 0.0.40
codegen_flags: <defaults>
</compile_context>

<pallas_src>
import functools

import jax
import jax.numpy as jnp
from jax.experimental import pallas as pl
from jax.experimental.pallas import tpu as pltpu


def _center_loss_kernel(true_b,
                        labels_ref, xi_ref, xb_ref, logits_ref, centers_t_ref,
                        ent_ref, ce_ref, dist_ref, push_ref):
    p = pl.program_id(0)
    i = pl.program_id(1)
    steps = pl.num_programs(1)

    @pl.when(i == 0)
    def _init():
        ent_ref[...] = jnp.zeros_like(ent_ref)
        ce_ref[...] = jnp.zeros_like(ce_ref)
        dist_ref[...] = jnp.zeros_like(dist_ref)
        push_ref[...] = jnp.zeros_like(push_ref)

    x = xi_ref[...]                    # [tB, D]  feature_i tile
    xb = xb_ref[...]                   # [tB, D]  feature_boundary tile
    logits = logits_ref[...]           # [tB, C]
    labels = labels_ref[...]           # [tB, 1]  int32
    centers_t = centers_t_ref[...]     # [D, C]   resident across the grid
    tb, c = logits.shape

    # Row-validity mask: padded batch rows contribute nothing to any sum.
    tile_idx = p * steps + i
    row_ids = tile_idx * tb + jax.lax.broadcasted_iota(jnp.int32, (tb, 1), 0)
    row_valid = (row_ids < true_b).astype(jnp.float32)                # [tB, 1]

    # Class mask built in-kernel (no materialized one-hot in HBM).
    mask = jax.lax.broadcasted_iota(jnp.int32, (tb, c), 1) == labels  # [tB, C]

    # ---- reweight pieces: entropy + soft-target cross entropy ------------
    m = jnp.max(logits, axis=1, keepdims=True)
    z = logits - m
    e = jnp.exp(z)
    s = jnp.sum(e, axis=1, keepdims=True)
    log_s = jnp.log(s)
    inv_s = pl.reciprocal(s, approx=False)
    # entropy = log(s) - sum(p*z) = log(s) - sum(e*z)/s   (no [tB,C] divide)
    entropy = log_s - jnp.sum(e * z, axis=1, keepdims=True) * inv_s   # [tB, 1]
    # -log_softmax at the label column == (log_s - z) at the label column
    nll = jnp.sum(jnp.where(mask, log_s - z, 0.0), axis=1, keepdims=True)

    # ---- center-loss distance ---------------------------------------------
    x2 = jnp.sum(x * x, axis=1, keepdims=True)                        # [tB, 1]
    c2 = jnp.sum(centers_t * centers_t, axis=0, keepdims=True)        # [1, C]
    xc = jnp.dot(x, centers_t, preferred_element_type=jnp.float32)    # [tB, C]
    distmat = x2 + c2 - 2.0 * xc
    # clamp AFTER masking (torch semantics: zeros become 1e-12)
    dist_row = jnp.sum(jnp.clip(jnp.where(mask, distmat, 0.0), 1e-12, 1e12),
                       axis=1, keepdims=True)                         # [tB, 1]

    # ---- push (MSE) term ----------------------------------------------------
    diff = x - xb
    push_row = jnp.sum(diff * diff, axis=1, keepdims=True)            # [tB, 1]

    # ---- accumulate per-split partial sums directly into the outputs -------
    ent_ref[...] += jnp.sum(entropy * row_valid).reshape(1, 1, 1)
    ce_ref[...] += jnp.sum(nll * row_valid).reshape(1, 1, 1)
    dist_ref[...] += jnp.sum(dist_row * row_valid).reshape(1, 1, 1)
    push_ref[...] += jnp.sum(push_row * row_valid).reshape(1, 1, 1)


def _lane_pad(n):
    return ((n + 127) // 128) * 128


def _sublane_pad(n):
    return ((n + 7) // 8) * 8


def _vmem_capacity_bytes():
    # Conservative fallback = v7x's 64 MiB physical VMEM (smallest of the
    # supported generations) so a tiling derived from it fits everywhere.
    try:
        cap = getattr(pltpu.get_tpu_info(), "vmem_capacity_bytes", None)
    except Exception:
        cap = None
    return int(cap) if cap else (64 << 20)


def _choose_tiling(b, d, c, force_tile=None, force_splits=None):
    cap = _vmem_capacity_bytes()
    vmem_limit = int(cap * 0.70)          # scoped limit handed to Mosaic
    budget = int(cap * 0.55)              # target footprint for our tiles

    # Padded per-row bytes for ONE pipeline buffer (last dim pads to 128 lanes):
    # two feature tensors + logits + labels (all 4-byte elements).
    per_row = 4 * (2 * _lane_pad(d) + _lane_pad(c) + _lane_pad(1))
    # Resident centers^T block (assumed still double-buffered, see TODO above).
    centers_bytes = 2 * 4 * _sublane_pad(d) * _lane_pad(c)
    headroom = 2 << 20                    # outputs + compiler-internal scratch
    avail = budget - centers_bytes - headroom
    tb_max = max((avail // (2 * per_row)) // 8 * 8, 8)

    if force_tile is not None:
        tb = int(force_tile)
    elif b <= tb_max:
        tb = b                            # one tile covers the whole batch
    else:
        tb = int(tb_max)

    tiles = -(-b // tb)
    if force_splits is not None:
        num_splits = int(force_splits)
    elif tiles >= 2 and (tiles % 2 == 0 or tiles >= 8):
        # Feeds both TensorCores on v7x; on 1-TC chips it is only enabled when
        # the extra padded tile is free (even tile count) or <= 1/8 of the work.
        # TODO(synk): gate on an actual per-chip core-count query once exposed.
        num_splits = 2
    else:
        num_splits = 1
    tiles = -(-tiles // num_splits) * num_splits
    return tb, tiles, num_splits, vmem_limit


def center_loss_reweighted(feature_i, feature_boundary, logits, labels, centers,
                           *, _force_tile=None, _force_splits=None):
    b, d = feature_i.shape
    c = centers.shape[0]

    tb, tiles, num_splits, vmem_limit = _choose_tiling(
        b, d, c, force_tile=_force_tile, force_splits=_force_splits)
    steps = tiles // num_splits
    padded_b = tb * tiles

    feature_i = feature_i.astype(jnp.float32)
    feature_boundary = feature_boundary.astype(jnp.float32)
    logits = logits.astype(jnp.float32)
    labels2d = labels.astype(jnp.int32).reshape(b, 1)
    centers_t = jnp.transpose(centers.astype(jnp.float32))            # [D, C]

    pad = padded_b - b
    if pad:
        # TODO(synk): pad-free ragged last tile via pl.BoundedSlice.
        feature_i = jnp.pad(feature_i, ((0, pad), (0, 0)))
        feature_boundary = jnp.pad(feature_boundary, ((0, pad), (0, 0)))
        logits = jnp.pad(logits, ((0, pad), (0, 0)))
        labels2d = jnp.pad(labels2d, ((0, pad), (0, 0)))

    batch_map = lambda p, i: (p * steps + i, 0)
    part_shape = jax.ShapeDtypeStruct((num_splits, 1, 1), jnp.float32)
    part_spec = pl.BlockSpec((1, 1, 1), lambda p, i: (p, 0, 0))

    ent_s, ce_s, dist_s, push_s = pl.pallas_call(
        functools.partial(_center_loss_kernel, b),
        out_shape=(part_shape,) * 4,
        grid_spec=pltpu.PrefetchScalarGridSpec(
            num_scalar_prefetch=0,
            grid=(num_splits, steps),
            in_specs=[
                pl.BlockSpec((tb, 1), batch_map),           # labels
                pl.BlockSpec((tb, d), batch_map),           # feature_i
                pl.BlockSpec((tb, d), batch_map),           # feature_boundary
                pl.BlockSpec((tb, c), batch_map),           # logits
                pl.BlockSpec((d, c), lambda p, i: (0, 0)),  # centers^T resident
            ],
            out_specs=(part_spec,) * 4,
        ),
        compiler_params=pltpu.CompilerParams(
            dimension_semantics=("parallel", "arbitrary"),
            vmem_limit_bytes=vmem_limit),
    )(labels2d, feature_i, feature_boundary, logits, centers_t)

    # Combine per-split partial sums + scalar finalize (tiny; done here so the
    # v7x two-core partials can be merged).
    inv_b = jnp.float32(1.0 / b)
    mean_entropy = jnp.sum(ent_s) * inv_b
    correctness = jnp.sum(ce_s) * inv_b
    dist_loss = jnp.sum(dist_s) * inv_b
    push = jnp.sum(push_s) * inv_b / d
    # pull = mean(weight * dist_loss) = (mean(entropy) + correctness) * dist_loss
    pull = jnp.clip((mean_entropy + correctness) * dist_loss, 0.0, 2.3025)
    push = jnp.clip(push, 0.0, 2.3025)
    ea = jnp.exp(jnp.float32(5.0))
    ep = jnp.exp(pull)
    eq = jnp.exp(push)
    return (ep - eq + ea) / (ep + eq + ea)


def center_loss_reweighted_ref(feature_i, feature_boundary, logits, labels, centers):
    """Pure-JAX reference mirroring the PyTorch forward."""
    b, c = logits.shape
    onehot = jax.nn.one_hot(labels, c, dtype=jnp.float32)
    logp = jax.nn.log_softmax(logits, axis=1)
    p = jax.nn.softmax(logits, axis=1)
    entropy = jnp.sum(-p * logp, axis=1)
    correctness = jnp.mean(jnp.sum(-onehot * logp, axis=1))
    weight = entropy + correctness
    x2 = jnp.sum(feature_i ** 2, axis=1, keepdims=True)
    c2 = jnp.sum(centers ** 2, axis=1)[None, :]
    distmat = x2 + c2 - 2.0 * feature_i @ centers.T
    dist_loss = jnp.sum(jnp.clip(distmat * onehot, 1e-12, 1e12)) / b
    pull = jnp.clip(jnp.mean(weight * dist_loss), 0.0, 2.3025)
    push = jnp.clip(jnp.mean((feature_i - feature_boundary) ** 2), 0.0, 2.3025)
    ea = jnp.exp(5.0)
    return (jnp.exp(pull) - jnp.exp(push) + ea) / (jnp.exp(pull) + jnp.exp(push) + ea)


if __name__ == "__main__":
    def make_inputs(key, b, c, d):
        k1, k2, k3, k4, k5 = jax.random.split(key, 5)
        fi = jax.random.normal(k1, (b, d), dtype=jnp.float32)
        fb = jax.random.normal(k2, (b, d), dtype=jnp.float32)
        lg = jax.random.normal(k3, (b, c), dtype=jnp.float32)
        lb = jax.random.randint(k4, (b,), 0, c, dtype=jnp.int32)
        ct = jax.random.normal(k5, (c, d), dtype=jnp.float32)   # nn.Parameter stand-in
        return fi, fb, lg, lb, ct

    NUM_CLASSES, FEAT_DIM = 10, 32

    # Case 1: small shapes, single tile, single split.
    fi, fb, lg, lb, ct = make_inputs(jax.random.PRNGKey(0), 8, NUM_CLASSES, FEAT_DIM)
    loss = center_loss_reweighted(fi, fb, lg, lb, ct)
    jax.block_until_ready(loss)
    ref = center_loss_reweighted_ref(fi, fb, lg, lb, ct)
    assert jnp.allclose(loss, ref, rtol=1e-5, atol=1e-5), (loss, ref)

    # Case 2: ragged batch exercising padding, row-masking and the 2-way
    # "parallel" split (grid (2, 2), padded_b = 64 > B = 37).
    fi, fb, lg, lb, ct = make_inputs(jax.random.PRNGKey(1), 37, NUM_CLASSES, FEAT_DIM)
    loss2 = center_loss_reweighted(fi, fb, lg, lb, ct, _force_tile=16, _force_splits=2)
    jax.block_until_ready(loss2)
    ref2 = center_loss_reweighted_ref(fi, fb, lg, lb, ct)
    assert jnp.allclose(loss2, ref2, rtol=1e-5, atol=1e-5), (loss2, ref2)

    print("KERNEL_OK")
</pallas_src>

<mosaic_0001>
module attributes {stable_mosaic.version = 11 : i64} {
  func.func @_center_loss_kernel(%arg0: i32, %arg1: i32, %arg2: memref<8x1xi32, #tpu.memory_space<vmem>>, %arg3: memref<8x32xf32, #tpu.memory_space<vmem>>, %arg4: memref<8x32xf32, #tpu.memory_space<vmem>>, %arg5: memref<8x10xf32, #tpu.memory_space<vmem>>, %arg6: memref<32x10xf32, #tpu.memory_space<vmem>>, %arg7: memref<1x1x1xf32, #tpu.memory_space<vmem>>, %arg8: memref<1x1x1xf32, #tpu.memory_space<vmem>>, %arg9: memref<1x1x1xf32, #tpu.memory_space<vmem>>, %arg10: memref<1x1x1xf32, #tpu.memory_space<vmem>>) attributes {dimension_semantics = [#tpu.dimension_semantics<parallel>, #tpu.dimension_semantics<arbitrary>], iteration_bounds = array<i64: 1, 1>, scalar_prefetch = 0 : i64, scratch_operands = 0 : i64, tpu.core_type = #tpu.core_type<tc>, window_params = [{transform_indices = @transform_0, window_bounds = array<i64: 8, 1>}, {transform_indices = @transform_1, window_bounds = array<i64: 8, 32>}, {transform_indices = @transform_2, window_bounds = array<i64: 8, 32>}, {transform_indices = @transform_3, window_bounds = array<i64: 8, 10>}, {pipeline_mode = #tpu.pipeline_mode<synchronous>, transform_indices = @transform_4, window_bounds = array<i64: 32, 10>}, {transform_indices = @transform_5, window_bounds = array<i64: 1, 1, 1>}, {transform_indices = @transform_6, window_bounds = array<i64: 1, 1, 1>}, {transform_indices = @transform_7, window_bounds = array<i64: 1, 1, 1>}, {transform_indices = @transform_8, window_bounds = array<i64: 1, 1, 1>}]} {
    %c0_i32 = arith.constant 0 : i32
    %0 = arith.cmpi eq, %arg1, %c0_i32 : i32
    %1 = arith.extui %0 : i1 to i32
    %c0_i32_0 = arith.constant 0 : i32
    %2 = arith.cmpi ne, %1, %c0_i32_0 : i32
    scf.if %2 {
      %cst_52 = arith.constant 0.000000e+00 : f32
      %102 = vector.broadcast %cst_52 : f32 to vector<1x1x1xf32>
      %c0_53 = arith.constant 0 : index
      %c0_54 = arith.constant 0 : index
      %c0_55 = arith.constant 0 : index
      %103 = vector.load %arg7[%c0_53, %c0_54, %c0_55] : memref<1x1x1xf32, #tpu.memory_space<vmem>>, vector<1x1x1xf32>
      tpu.vector_store %arg7[%c0_53, %c0_54, %c0_55], %102 {strides = array<i32>} : memref<1x1x1xf32, #tpu.memory_space<vmem>>, vector<1x1x1xf32>,
      %cst_56 = arith.constant 0.000000e+00 : f32
      %104 = vector.broadcast %cst_56 : f32 to vector<1x1x1xf32>
      %c0_57 = arith.constant 0 : index
      %c0_58 = arith.constant 0 : index
      %c0_59 = arith.constant 0 : index
      %105 = vector.load %arg8[%c0_57, %c0_58, %c0_59] : memref<1x1x1xf32, #tpu.memory_space<vmem>>, vector<1x1x1xf32>
      tpu.vector_store %arg8[%c0_57, %c0_58, %c0_59], %104 {strides = array<i32>} : memref<1x1x1xf32, #tpu.memory_space<vmem>>, vector<1x1x1xf32>,
      %cst_60 = arith.constant 0.000000e+00 : f32
      %106 = vector.broadcast %cst_60 : f32 to vector<1x1x1xf32>
      %c0_61 = arith.constant 0 : index
      %c0_62 = arith.constant 0 : index
      %c0_63 = arith.constant 0 : index
      %107 = vector.load %arg9[%c0_61, %c0_62, %c0_63] : memref<1x1x1xf32, #tpu.memory_space<vmem>>, vector<1x1x1xf32>
      tpu.vector_store %arg9[%c0_61, %c0_62, %c0_63], %106 {strides = array<i32>} : memref<1x1x1xf32, #tpu.memory_space<vmem>>, vector<1x1x1xf32>,
      %cst_64 = arith.constant 0.000000e+00 : f32
      %108 = vector.broadcast %cst_64 : f32 to vector<1x1x1xf32>
      %c0_65 = arith.constant 0 : index
      %c0_66 = arith.constant 0 : index
      %c0_67 = arith.constant 0 : index
      %109 = vector.load %arg10[%c0_65, %c0_66, %c0_67] : memref<1x1x1xf32, #tpu.memory_space<vmem>>, vector<1x1x1xf32>
      tpu.vector_store %arg10[%c0_65, %c0_66, %c0_67], %108 {strides = array<i32>} : memref<1x1x1xf32, #tpu.memory_space<vmem>>, vector<1x1x1xf32>,
    } else {
    }
    %c0 = arith.constant 0 : index
    %c0_1 = arith.constant 0 : index
    %3 = vector.load %arg3[%c0, %c0_1] : memref<8x32xf32, #tpu.memory_space<vmem>>, vector<8x32xf32>
    %c0_2 = arith.constant 0 : index
    %c0_3 = arith.constant 0 : index
    %4 = vector.load %arg4[%c0_2, %c0_3] : memref<8x32xf32, #tpu.memory_space<vmem>>, vector<8x32xf32>
    %c0_4 = arith.constant 0 : index
    %c0_5 = arith.constant 0 : index
    %5 = vector.load %arg5[%c0_4, %c0_5] : memref<8x10xf32, #tpu.memory_space<vmem>>, vector<8x10xf32>
    %c0_6 = arith.constant 0 : index
    %c0_7 = arith.constant 0 : index
    %6 = vector.load %arg2[%c0_6, %c0_7] : memref<8x1xi32, #tpu.memory_space<vmem>>, vector<8x1xi32>
    %c0_8 = arith.constant 0 : index
    %c0_9 = arith.constant 0 : index
    %7 = vector.load %arg6[%c0_8, %c0_9] : memref<32x10xf32, #tpu.memory_space<vmem>>, vector<32x10xf32>
    %c1_i32 = arith.constant 1 : i32
    %8 = arith.muli %arg0, %c1_i32 : i32
    %9 = arith.addi %8, %arg1 : i32
    %c8_i32 = arith.constant 8 : i32
    %10 = arith.muli %9, %c8_i32 : i32
    %11 = tpu.iota {dimensions = array<i32: 0>} : vector<8x1xi32>
    %12 = vector.broadcast %10 : i32 to vector<8x1xi32>
    %13 = arith.addi %12, %11 : vector<8x1xi32>
    %c8_i32_10 = arith.constant 8 : i32
    %14 = vector.broadcast %c8_i32_10 : i32 to vector<8x1xi32>
    %15 = arith.cmpi slt, %13, %14 : vector<8x1xi32>
    %16 = arith.extui %15 : vector<8x1xi1> to vector<8x1xi32>
    %17 = arith.sitofp %16 : vector<8x1xi32> to vector<8x1xf32>
    %18 = tpu.iota {dimensions = array<i32: 1>} : vector<8x10xi32>
    %19 = vector.broadcast %6 : vector<8x1xi32> to vector<8x10xi32>
    %20 = arith.cmpi eq, %18, %19 : vector<8x10xi32>
    %cst = arith.constant dense<0xFF800000> : vector<8xf32>
    %21 = vector.multi_reduction <maximumf>, %5, %cst [1] : vector<8x10xf32> to vector<8xf32>
    %22 = vector.shape_cast %21 : vector<8xf32> to vector<8x1xf32>
    %23 = vector.broadcast %22 : vector<8x1xf32> to vector<8x10xf32>
    %24 = arith.subf %5, %23 : vector<8x10xf32>
    %25 = math.exp %24 : vector<8x10xf32>
    %cst_11 = arith.constant dense<0.000000e+00> : vector<8xf32>
    %26 = vector.multi_reduction <add>, %25, %cst_11 [1] : vector<8x10xf32> to vector<8xf32>
    %27 = vector.shape_cast %26 : vector<8xf32> to vector<8x1xf32>
    %28 = math.log %27 : vector<8x1xf32>
    %29 = tpu.reciprocal %27 : vector<8x1xf32> -> vector<8x1xf32>
    %30 = arith.mulf %25, %24 : vector<8x10xf32>
    %cst_12 = arith.constant dense<0.000000e+00> : vector<8xf32>
    %31 = vector.multi_reduction <add>, %30, %cst_12 [1] : vector<8x10xf32> to vector<8xf32>
    %32 = vector.shape_cast %31 : vector<8xf32> to vector<8x1xf32>
    %33 = arith.mulf %32, %29 : vector<8x1xf32>
    %34 = arith.subf %28, %33 : vector<8x1xf32>
    %35 = vector.broadcast %28 : vector<8x1xf32> to vector<8x10xf32>
    %36 = arith.subf %35, %24 : vector<8x10xf32>
    %cst_13 = arith.constant 0.000000e+00 : f32
    %37 = vector.broadcast %cst_13 : f32 to vector<8x10xf32>
    %38 = arith.select %20, %36, %37 : vector<8x10xi1>, vector<8x10xf32>
    %cst_14 = arith.constant dense<0.000000e+00> : vector<8xf32>
    %39 = vector.multi_reduction <add>, %38, %cst_14 [1] : vector<8x10xf32> to vector<8xf32>
    %40 = vector.shape_cast %39 : vector<8xf32> to vector<8x1xf32>
    %41 = arith.mulf %3, %3 : vector<8x32xf32>
    %cst_15 = arith.constant dense<0.000000e+00> : vector<8xf32>
    %42 = vector.multi_reduction <add>, %41, %cst_15 [1] : vector<8x32xf32> to vector<8xf32>
    %43 = vector.shape_cast %42 : vector<8xf32> to vector<8x1xf32>
    %44 = arith.mulf %7, %7 : vector<32x10xf32>
    %cst_16 = arith.constant dense<0.000000e+00> : vector<10xf32>
    %45 = vector.multi_reduction <add>, %44, %cst_16 [0] : vector<32x10xf32> to vector<10xf32>
    %46 = vector.shape_cast %45 : vector<10xf32> to vector<1x10xf32>
    %cst_17 = arith.constant dense<0.000000e+00> : vector<8x10xf32>
    %47 = tpu.matmul %3, %7, %cst_17 {dimension_numbers = #tpu.dot_dimension_numbers<[1], [0], [0], [1], [0, 0, 1, 1], [], []>} : vector<8x32xf32>, vector<32x10xf32>, vector<8x10xf32> -> vector<8x10xf32>
    %48 = vector.broadcast %43 : vector<8x1xf32> to vector<8x10xf32>
    %49 = vector.broadcast %46 : vector<1x10xf32> to vector<8x10xf32>
    %50 = arith.addf %48, %49 : vector<8x10xf32>
    %cst_18 = arith.constant 2.000000e+00 : f32
    %51 = vector.broadcast %cst_18 : f32 to vector<8x10xf32>
    %52 = arith.mulf %51, %47 : vector<8x10xf32>
    %53 = arith.subf %50, %52 : vector<8x10xf32>
    %cst_19 = arith.constant 0.000000e+00 : f32
    %54 = vector.broadcast %cst_19 : f32 to vector<8x10xf32>
    %55 = arith.select %20, %53, %54 : vector<8x10xi1>, vector<8x10xf32>
    %cst_20 = arith.constant 9.99999996E-13 : f32
    %cst_21 = arith.constant 9.99999995E+11 : f32
    %56 = vector.broadcast %cst_20 : f32 to vector<8x10xf32>
    %57 = arith.maximumf %56, %55 : vector<8x10xf32>
    %58 = vector.broadcast %cst_21 : f32 to vector<8x10xf32>
    %59 = arith.minimumf %58, %57 : vector<8x10xf32>
    %cst_22 = arith.constant dense<0.000000e+00> : vector<8xf32>
    %60 = vector.multi_reduction <add>, %59, %cst_22 [1] : vector<8x10xf32> to vector<8xf32>
    %61 = vector.shape_cast %60 : vector<8xf32> to vector<8x1xf32>
    %62 = arith.subf %3, %4 : vector<8x32xf32>
    %63 = arith.mulf %62, %62 : vector<8x32xf32>
    %cst_23 = arith.constant dense<0.000000e+00> : vector<8xf32>
    %64 = vector.multi_reduction <add>, %63, %cst_23 [1] : vector<8x32xf32> to vector<8xf32>
    %65 = vector.shape_cast %64 : vector<8xf32> to vector<8x1xf32>
    %c0_24 = arith.constant 0 : index
    %c0_25 = arith.constant 0 : index
    %c0_26 = arith.constant 0 : index
    %66 = vector.load %arg7[%c0_24, %c0_25, %c0_26] : memref<1x1x1xf32, #tpu.memory_space<vmem>>, vector<1x1x1xf32>
    %67 = arith.mulf %34, %17 : vector<8x1xf32>
    %68 = vector.shape_cast %67 : vector<8x1xf32> to vector<1x8x1xf32>
    %cst_27 = arith.constant dense<0.000000e+00> : vector<1xf32>
    %69 = vector.multi_reduction <add>, %68, %cst_27 [1, 2] : vector<1x8x1xf32> to vector<1xf32>
    %70 = vector.shape_cast %69 : vector<1xf32> to vector<1x1x1xf32>
    %71 = vector.extract %70[0, 0, 0] : f32 from vector<1x1x1xf32>
    %72 = vector.broadcast %71 : f32 to vector<1x1x1xf32>
    %73 = arith.addf %66, %72 : vector<1x1x1xf32>
    %c0_28 = arith.constant 0 : index
    %c0_29 = arith.constant 0 : index
    %c0_30 = arith.constant 0 : index
    %74 = vector.load %arg7[%c0_28, %c0_29, %c0_30] : memref<1x1x1xf32, #tpu.memory_space<vmem>>, vector<1x1x1xf32>
    tpu.vector_store %arg7[%c0_28, %c0_29, %c0_30], %73 {strides = array<i32>} : memref<1x1x1xf32, #tpu.memory_space<vmem>>, vector<1x1x1xf32>,
    %c0_31 = arith.constant 0 : index
    %c0_32 = arith.constant 0 : index
    %c0_33 = arith.constant 0 : index
    %75 = vector.load %arg8[%c0_31, %c0_32, %c0_33] : memref<1x1x1xf32, #tpu.memory_space<vmem>>, vector<1x1x1xf32>
    %76 = arith.mulf %40, %17 : vector<8x1xf32>
    %77 = vector.shape_cast %76 : vector<8x1xf32> to vector<1x8x1xf32>
    %cst_34 = arith.constant dense<0.000000e+00> : vector<1xf32>
    %78 = vector.multi_reduction <add>, %77, %cst_34 [1, 2] : vector<1x8x1xf32> to vector<1xf32>
    %79 = vector.shape_cast %78 : vector<1xf32> to vector<1x1x1xf32>
    %80 = vector.extract %79[0, 0, 0] : f32 from vector<1x1x1xf32>
    %81 = vector.broadcast %80 : f32 to vector<1x1x1xf32>
    %82 = arith.addf %75, %81 : vector<1x1x1xf32>
    %c0_35 = arith.constant 0 : index
    %c0_36 = arith.constant 0 : index
    %c0_37 = arith.constant 0 : index
    %83 = vector.load %arg8[%c0_35, %c0_36, %c0_37] : memref<1x1x1xf32, #tpu.memory_space<vmem>>, vector<1x1x1xf32>
    tpu.vector_store %arg8[%c0_35, %c0_36, %c0_37], %82 {strides = array<i32>} : memref<1x1x1xf32, #tpu.memory_space<vmem>>, vector<1x1x1xf32>,
    %c0_38 = arith.constant 0 : index
    %c0_39 = arith.constant 0 : index
    %c0_40 = arith.constant 0 : index
    %84 = vector.load %arg9[%c0_38, %c0_39, %c0_40] : memref<1x1x1xf32, #tpu.memory_space<vmem>>, vector<1x1x1xf32>
    %85 = arith.mulf %61, %17 : vector<8x1xf32>
    %86 = vector.shape_cast %85 : vector<8x1xf32> to vector<1x8x1xf32>
    %cst_41 = arith.constant dense<0.000000e+00> : vector<1xf32>
    %87 = vector.multi_reduction <add>, %86, %cst_41 [1, 2] : vector<1x8x1xf32> to vector<1xf32>
    %88 = vector.shape_cast %87 : vector<1xf32> to vector<1x1x1xf32>
    %89 = vector.extract %88[0, 0, 0] : f32 from vector<1x1x1xf32>
    %90 = vector.broadcast %89 : f32 to vector<1x1x1xf32>
    %91 = arith.addf %84, %90 : vector<1x1x1xf32>
    %c0_42 = arith.constant 0 : index
    %c0_43 = arith.constant 0 : index
    %c0_44 = arith.constant 0 : index
    %92 = vector.load %arg9[%c0_42, %c0_43, %c0_44] : memref<1x1x1xf32, #tpu.memory_space<vmem>>, vector<1x1x1xf32>
    tpu.vector_store %arg9[%c0_42, %c0_43, %c0_44], %91 {strides = array<i32>} : memref<1x1x1xf32, #tpu.memory_space<vmem>>, vector<1x1x1xf32>,
    %c0_45 = arith.constant 0 : index
    %c0_46 = arith.constant 0 : index
    %c0_47 = arith.constant 0 : index
    %93 = vector.load %arg10[%c0_45, %c0_46, %c0_47] : memref<1x1x1xf32, #tpu.memory_space<vmem>>, vector<1x1x1xf32>
    %94 = arith.mulf %65, %17 : vector<8x1xf32>
    %95 = vector.shape_cast %94 : vector<8x1xf32> to vector<1x8x1xf32>
    %cst_48 = arith.constant dense<0.000000e+00> : vector<1xf32>
    %96 = vector.multi_reduction <add>, %95, %cst_48 [1, 2] : vector<1x8x1xf32> to vector<1xf32>
    %97 = vector.shape_cast %96 : vector<1xf32> to vector<1x1x1xf32>
    %98 = vector.extract %97[0, 0, 0] : f32 from vector<1x1x1xf32>
    %99 = vector.broadcast %98 : f32 to vector<1x1x1xf32>
    %100 = arith.addf %93, %99 : vector<1x1x1xf32>
    %c0_49 = arith.constant 0 : index
    %c0_50 = arith.constant 0 : index
    %c0_51 = arith.constant 0 : index
    %101 = vector.load %arg10[%c0_49, %c0_50, %c0_51] : memref<1x1x1xf32, #tpu.memory_space<vmem>>, vector<1x1x1xf32>
    tpu.vector_store %arg10[%c0_49, %c0_50, %c0_51], %100 {strides = array<i32>} : memref<1x1x1xf32, #tpu.memory_space<vmem>>, vector<1x1x1xf32>,
    return
  }
  func.func @transform_0(%arg0: i32, %arg1: i32) -> (i32, i32) {
    %c1_i32 = arith.constant 1 : i32
    %0 = arith.muli %arg0, %c1_i32 : i32
    %1 = arith.addi %0, %arg1 : i32
    %c0_i32 = arith.constant 0 : i32
    %c0_i32_0 = arith.constant 0 : i32
    return %1, %c0_i32 : i32, i32
  }
  func.func @transform_1(%arg0: i32, %arg1: i32) -> (i32, i32) {
    %c1_i32 = arith.constant 1 : i32
    %0 = arith.muli %arg0, %c1_i32 : i32
    %1 = arith.addi %0, %arg1 : i32
    %c0_i32 = arith.constant 0 : i32
    %c0_i32_0 = arith.constant 0 : i32
    return %1, %c0_i32 : i32, i32
  }
  func.func @transform_2(%arg0: i32, %arg1: i32) -> (i32, i32) {
    %c1_i32 = arith.constant 1 : i32
    %0 = arith.muli %arg0, %c1_i32 : i32
    %1 = arith.addi %0, %arg1 : i32
    %c0_i32 = arith.constant 0 : i32
    %c0_i32_0 = arith.constant 0 : i32
    return %1, %c0_i32 : i32, i32
  }
  func.func @transform_3(%arg0: i32, %arg1: i32) -> (i32, i32) {
    %c1_i32 = arith.constant 1 : i32
    %0 = arith.muli %arg0, %c1_i32 : i32
    %1 = arith.addi %0, %arg1 : i32
    %c0_i32 = arith.constant 0 : i32
    %c0_i32_0 = arith.constant 0 : i32
    return %1, %c0_i32 : i32, i32
  }
  func.func @transform_4(%arg0: i32, %arg1: i32) -> (i32, i32) {
    %c0_i32 = arith.constant 0 : i32
    %c0_i32_0 = arith.constant 0 : i32
    %c0_i32_1 = arith.constant 0 : i32
    return %c0_i32, %c0_i32_0 : i32, i32
  }
  func.func @transform_5(%arg0: i32, %arg1: i32) -> (i32, i32, i32) {
    %c0_i32 = arith.constant 0 : i32
    %c0_i32_0 = arith.constant 0 : i32
    %c0_i32_1 = arith.constant 0 : i32
    return %arg0, %c0_i32, %c0_i32_0 : i32, i32, i32
  }
  func.func @transform_6(%arg0: i32, %arg1: i32) -> (i32, i32, i32) {
    %c0_i32 = arith.constant 0 : i32
    %c0_i32_0 = arith.constant 0 : i32
    %c0_i32_1 = arith.constant 0 : i32
    return %arg0, %c0_i32, %c0_i32_0 : i32, i32, i32
  }
  func.func @transform_7(%arg0: i32, %arg1: i32) -> (i32, i32, i32) {
    %c0_i32 = arith.constant 0 : i32
    %c0_i32_0 = arith.constant 0 : i32
    %c0_i32_1 = arith.constant 0 : i32
    return %arg0, %c0_i32, %c0_i32_0 : i32, i32, i32
  }
  func.func @transform_8(%arg0: i32, %arg1: i32) -> (i32, i32, i32) {
    %c0_i32 = arith.constant 0 : i32
    %c0_i32_0 = arith.constant 0 : i32
    %c0_i32_1 = arith.constant 0 : i32
    return %arg0, %c0_i32, %c0_i32_0 : i32, i32, i32
  }
}

</mosaic_0001>

<bundles_post_ra>
// kernel: tpu_custom_call.1
= control target key start
LH: loop header
LB: loop body
LE: loop exit
PB: predicated region body
PF: predicated region fallthrough
CT: control target
= control target key end

     0   :  { %14 = vsyncpa [#allocation3], 0  ;;  %s714_s0 = inlined_call_operand.vmem [shape: s32[8,1], index: 0, kind: input, shape index: {}]   ;;  %s715_s1 = inlined_call_operand.vmem [shape: f32[8,32], index: 1, kind: input, shape index: {}]   ;;  %s716_s2 = inlined_call_operand.vmem [shape: f32[8,32], index: 2, kind: input, shape index: {}]   ;;  %s717_s3 = inlined_call_operand.vmem [shape: f32[8,10], index: 3, kind: input, shape index: {}]   ;;  %s718_s4 = inlined_call_operand.vmem [shape: f32[32,10], index: 4, kind: input, shape index: {}]   ;;  %s719_s5 = inlined_call_operand.hbm [shape: f32[1,1,1], index: 5, kind: output, shape index: {0}]   ;;  %s720_s6 = inlined_call_operand.hbm [shape: f32[1,1,1], index: 6, kind: output, shape index: {1}]   ;;  %s721_s7 = inlined_call_operand.hbm [shape: f32[1,1,1], index: 7, kind: output, shape index: {2}]   ;;  %s722_s8 = inlined_call_operand.hbm [shape: f32[1,1,1], index: 8, kind: output, shape index: {3}]  }
   0x1   :  { %15 = vsyncpa [#allocation5], 0  ;;  %v106_v0 = vld [vmem:[%s717_s3] sm:$0xff]  ;;  %vm127_vm0 = vcmask 80896   ;;  %v109_v2 = vld [vmem:[%s718_s4 + $0x8] sm:$0xff]  ;;  %v542_v4 = vmov 0.0|0.0  }
   0x2   :  { %v108_v1 = vld [vmem:[%s718_s4] sm:$0xff]  ;;  %v128_v3 = vsel %vm127_vm0, %v106_v0, -inf  ;;  %418 = vmatprep.subr.bf16.mxu0 %v542_v4  ;;  %v157_v6 = vmul.f32 %v109_v2, %v109_v2  ;;  %v110_v8 = vld [vmem:[%s718_s4 + $0x10] sm:$0xff]  ;;  %v111_v9 = vld [vmem:[%s718_s4 + $0x18] sm:$0xff] }
   0x3   :  { %v156_v5 = vmul.f32 %v108_v1, %v108_v1  ;;  %v419_v7 = vpack.c.bf16 %v109_v2, %v108_v1  ;;  %129 = vmax.xlane.f32.xlu0 %v128_v3  ;;  %v158_v10 = vmul.f32 %v110_v8, %v110_v8 }
   0x4   :  { %16 = vsyncpa [#allocation8], 0  ;;  %v161_v12 = vsel %vm127_vm0, %v157_v6, 0.0  ;;  %v422_v13 = vpack.c.bf16 %v111_v9, %v110_v8  ;;  %vm543_vm1 = vmmov 0   ;;  %v544_v14 = vmov 0.0   ;;  %v104_v18 = vld [vmem:[%s715_s1] sm:$0xff] }
   0x5   :  { %v160_v11 = vsel %vm127_vm0, %v156_v5, 0.0  ;;  %420 = vmatpush3.bf16.msra.mxu0 %v419_v7  ;;  %415 = vmatprep.mubr.msk.f32.mxu0 %vm543_vm1, %v544_v14  ;;  %v163_v16 = vsel %vm127_vm0, %v158_v10, 0.0  ;;  %vm152_vm2 = vcmask 261120   ;;  %v151_v19 = vmul.f32 %v104_v18, %v104_v18  ;;  %v107_v25 = vld [vmem:[%s714_s0] sm:$0xff]  ;;  %s546_s17 = smov [#allocation2]  }
   0x6   :  { %v162_v15 = vadd.f32 %v161_v12, %v160_v11  ;;  %421 = vmatprep.subr.bf16.mxu0 %v542_v4  ;;  %v159_v21 = vmul.f32 %v111_v9, %v111_v9  ;;  %v545_v24 = vmov 0   ;;  %v121_v39 = vlaneseq  ;;  %v105_v53 = vld [vmem:[%s716_s2] sm:$0xff]  ;;  %s328_s18 = sshll.u32 %s546_s17, 4  ;;  %s329_s18 = int_to_ptr.vmem [resolvable:$true] %s328_s18 }
   0x7   :  { %v153_v20 = vsel %vm152_vm2, %v151_v19, 0.0  ;;  %440 = vset.pattern.permute.xlu1 %v545_v24  ;;  %441 = vset.pattern.permute.xlu0 %v545_v24  ;;  %v255_v55 = vsub.f32 %v104_v18, %v105_v53  ;;  %vm262_vm4 = vcmask 7168   ;;  %vm99_vm5 = vcmask 0   ;;  %s448_s19 = scalar_lea.vmem %s329_s18, 16  ;;  %s452_s20 = scalar_lea.vmem %s329_s18, 32 }
   0x8   :  { %v164_v17 = vadd.f32 %v163_v16, %v162_v15  ;;  %154 = vadd.xlane.f32.xlu1 %v153_v20  ;;  %v165_v22 = vsel %vm127_vm0, %v159_v21, 0.0  ;;  %v122_v41 = vand.u32 127, %v121_v39  ;;  %100 = vst.msk [vmem:[#allocation2] sm:$0x1] %vm99_vm5, %v544_v14  ;;  %101 = vst.msk [vmem:[#allocation4] sm:$0x1] %vm99_vm5, %v544_v14  ;;  %p449_p0 = scmp.ne.s32.totalorder %s329_s18, %s448_s19  ;;  %p453_p1 = scmp.lt.s32.totalorder %s329_s18, %s329_s18 }
   0x9   :  { %423 = vmatpush3.bf16.msra.mxu0 %v422_v13  ;;  %v256_v62 = vmul.f32 %v255_v55, %v255_v55  ;;  %102 = vst.msk [vmem:[#allocation6] sm:$0x1] %vm99_vm5, %v544_v14  ;;  %103 = vst.msk [vmem:[#allocation7] sm:$0x1] %vm99_vm5, %v544_v14  ;;  %p454_p2 = scmp.lt.s32.totalorder %s452_s20, %s448_s19 }
   0xa   :  { %v166_v23 = vadd.f32 %v165_v22, %v164_v17 }
   0xb   :  { %v257_v2 = vsel %vm152_vm2, %v256_v62, 0.0  ;;  %p455_p3 = por %p454_p2, %p453_p1 }
   0xc   :  { %416 = vmatmul.mubr.msk.f32.vlgmr.msra.gmra.mrb[0].mxu0 %vm152_vm2, %v104_v18  ;;  %v167_v33 = vrot.slane %v166_v23, 4 }
   0xd   :  { %p456_p4 = pnand %p455_p3, %p449_p0 }
   0xe   :  { %v168_v34 = vadd.f32 %v167_v33, %v166_v23 }
   0xf   :  { %v260_v14 = vld [vmem:[#allocation2] sm:$0x1] }
  0x10   :  { %v169_v35 = vrot.slane %v168_v34, 2 }
  0x12   :  { %v170_v36 = vadd.f32 %v169_v35, %v168_v34 }
  0x14   :  { %v171_v37 = vrot.slane %v170_v36, 1 }
  0x16   :  { %v172_v40 = vadd.f32 %v171_v37, %v170_v36 }
  0x19   :  { %124 = vperm.xlu1 %440, %v107_v25  }
  0x90   :  { %v130_v26 = vpop.xlane.xlu0 %129 }
  0x91   :  { %v131_v27 = vsub.f32 %v106_v0, %v130_v26 }
  0x93   :  { %v132_v28 = vmul.f32 1.442695, %v131_v27 }
  0x95   :  { %442 = vpow2.f32 %v132_v28  ;;  %v155_v38 = vpop.xlane.xlu1 %154 }
  0x96   :  { %v246_v42 = vadd.f32 %v172_v40, %v155_v38 }
  0x99   :  { %v125_v43 = vpop.permute.xlu1 %124 }
  0x9a   :  { %vm126_vm3 = vcmp.eq.s32.totalorder %v122_v41, %v125_v43 }
  0x9f   :  { %v443_v29 = vpop.eup %442 }
  0xa0   :  { %v134_v30 = vsel %vm127_vm0, %v443_v29, 0.0  ;;  %v140_v31 = vmul.f32 %v443_v29, %v131_v27 }
  0xa1   :  { %135 = vadd.xlane.f32.xlu0 %v134_v30 }
  0xa2   :  { %v141_v32 = vsel %vm127_vm0, %v140_v31, 0.0 }
  0xa5   :  { %142 = vadd.xlane.f32.xlu0 %v141_v32 }
  0xdf   :  { %v242_v44 = vpop.f32.mrb[0].mxu0 }
  0xe0   :  { %v247_v45 = vmul.f32 2.0, %v242_v44  ;;  %v417_v46 = vpop.f32.mrb[1].mxu0 }
  0xe2   :  { %v248_v47 = vsub.f32 %v246_v42, %v247_v45 }
  0xe4   :  { %v249_v48 = vsel %vm126_vm3, %v248_v47, 0.0 }
  0xe5   :  { %v250_v49 = vmax.f32 %v249_v48, 1e-12 }
  0xe7   :  { %v251_v50 = vmin.f32 %v250_v49, 1e+12 }
  0xe9   :  { %v252_v51 = vsel %vm127_vm0, %v251_v50, 0.0 }
  0xea   :  { %253 = vadd.xlane.f32.xlu0 %v252_v51 }
 0x12e   :  { %v136_v52 = vpop.xlane.xlu0 %135 }
 0x12f   :  { %444 = vlog2.f32 %v136_v52 }
 0x130   :  { %446 = vrcp.f32 %v136_v52 }
 0x132   :  { %v143_v57 = vpop.xlane.xlu0 %142 }
 0x139   :  { %v445_v54 = vpop.eup %444 }
 0x13a   :  { %v447_v56 = vpop.eup %446  ;;  %v138_v58 = vmul.f32 0.6931472, %v445_v54 }
 0x13b   :  { %v144_v59 = vmul.f32 %v447_v56, %v143_v57 }
 0x13c   :  { %v146_v60 = vsub.f32 %v138_v58, %v131_v27 }
 0x13d   :  { %v145_v61 = vsub.f32 %v138_v58, %v144_v59 }
 0x13e   :  { %v147_v63 = vsel %vm126_vm3, %v146_v60, 0.0 }
 0x13f   :  { %v263_v0 = vsel %vm262_vm4, %v145_v61, 0.0  ;;  %v148_v1 = vsel %vm127_vm0, %v147_v63, 0.0 }
 0x140   :  { %264 = vadd.xlane.f32.xlu1 %v263_v0  ;;  %149 = vadd.xlane.f32.xlu0 %v148_v1 }
 0x144   :  { %258 = vadd.xlane.f32.xlu0 %v257_v2 }
 0x177   :  { %v254_v3 = vpop.xlane.xlu0 %253 }
 0x178   :  { %v294_v4 = vsel %vm262_vm4, %v254_v3, 0.0 }
 0x179   :  { %295 = vadd.xlane.f32.xlu0 %v294_v4 }
 0x1cd   :  { %v265_v5 = vpop.xlane.xlu1 %264  ;;  %v150_v6 = vpop.xlane.xlu0 %149 }
 0x1ce   :  { %v266_v7 = vrot.slane %v265_v5, 4  ;;  %v279_v8 = vsel %vm262_vm4, %v150_v6, 0.0 }
 0x1cf   :  { %280 = vadd.xlane.f32.xlu0 %v279_v8 }
 0x1d0   :  { %v267_v9 = vadd.f32 %v266_v7, %v265_v5 }
 0x1d1   :  { %v259_v10 = vpop.xlane.xlu0 %258 }
 0x1d2   :  { %v268_v11 = vrot.slane %v267_v9, 2  ;;  %v309_v12 = vsel %vm262_vm4, %v259_v10, 0.0 }
 0x1d3   :  { %310 = vadd.xlane.f32.xlu0 %v309_v12 }
 0x1d4   :  { %v269_v13 = vadd.f32 %v268_v11, %v267_v9 }
 0x1d6   :  { %v270_v15 = vrot.slane %v269_v13, 1 }
 0x1d8   :  { %v271_v16 = vadd.f32 %v270_v15, %v269_v13 }
 0x1da   :  { %424 = vpush %v271_v16 }
 0x20b   :  { %s425_s2 = spop %424 }
 0x20c   :  { %v273_v17 = vstv %s425_s2 }
 0x20d   :  { %v274_v18 = vadd.f32 %v273_v17, %v260_v14 }
 0x20f   :  { %276 = vst.msk [vmem:[#allocation2] sm:$0x1] %vm99_vm5, %v274_v18 }
 0x210   :  { %459 = shalt.err (!%p456_p4)
}
 0x211   :  { %s460_s23 = scalar_lea.hbm %s719_s5, 16 }
 0x212   :  { %p461_p5 = scmp.ne.s32.totalorder %s719_s5, %s460_s23  ;;  %p464_p6 = scmp.lt.u32.totalorder %s460_s23, %s719_s5 }
 0x214   :  { %p466_p7 = pnand %p464_p6, %p461_p5 }
 0x216   :  { %469 = shalt.err (!%p466_p7)
}
 0x217   :  { %331 = dma.vmem_to_hbm [thread:$0]  %s329_s18, 16, %s719_s5, [#allocation3]   ;;  %v296_v19 = vpop.xlane.xlu0 %295  ;;  %v277_v40 = vld [vmem:[#allocation4] sm:$0x1]  ;;  %v292_v41 = vld [vmem:[#allocation6] sm:$0x1] }
 0x218   :  { %v297_v20 = vrot.slane %v296_v19, 4  ;;  %s547_s5 = smov [#allocation4]   ;;  %s548_s10 = smov [#allocation6]   ;;  %v307_v46 = vld [vmem:[#allocation7] sm:$0x1] }
 0x219   :  { %s338_s30 = sshll.u32 %s547_s5, 4  ;;  %s348_s11 = sshll.u32 %s548_s10, 4  ;;  %s339_s30 = int_to_ptr.vmem [resolvable:$true] %s338_s30  ;;  %s659_s11 = int_to_ptr.vmem [resolvable:$true] %s348_s11 }
 0x21a   :  { %v298_v21 = vadd.f32 %v297_v20, %v296_v19  ;;  %s549_s3 = smov [#allocation7]   ;;  %s470_s14 = scalar_lea.vmem %s339_s30, 16 }
 0x21b   :  { %s358_s13 = sshll.u32 %s549_s3, 4  ;;  %p471_p8 = scmp.ne.s32.totalorder %s339_s30, %s470_s14  ;;  %s662_s13 = int_to_ptr.vmem [resolvable:$true] %s358_s13 }
 0x21c   :  { %v299_v22 = vrot.slane %v298_v21, 2  ;;  %s474_s15 = scalar_lea.vmem %s339_s30, 32  ;;  %p475_p9 = scmp.lt.s32.totalorder %s339_s30, %s339_s30 }
 0x21d   :  { %p476_p10 = scmp.lt.s32.totalorder %s474_s15, %s470_s14 }
 0x21e   :  { %v300_v27 = vadd.f32 %v299_v22, %v298_v21 }
 0x21f   :  { %p477_p11 = por %p476_p10, %p475_p9 }
 0x220   :  { %v301_v32 = vrot.slane %v300_v27, 1 }
 0x221   :  { %p478_p12 = pnand %p477_p11, %p471_p8 }
 0x222   :  { %v302_v37 = vadd.f32 %v301_v32, %v300_v27 }
 0x25c   :  { %v281_v23 = vpop.xlane.xlu0 %280 }
 0x25d   :  { %v282_v24 = vrot.slane %v281_v23, 4 }
 0x25f   :  { %v283_v25 = vadd.f32 %v282_v24, %v281_v23 }
 0x260   :  { %v311_v26 = vpop.xlane.xlu0 %310 }
 0x261   :  { %v284_v28 = vrot.slane %v283_v25, 2  ;;  %v312_v29 = vrot.slane %v311_v26, 4 }
 0x263   :  { %v313_v30 = vadd.f32 %v312_v29, %v311_v26  ;;  %v285_v31 = vadd.f32 %v284_v28, %v283_v25 }
 0x265   :  { %v314_v33 = vrot.slane %v313_v30, 2  ;;  %v286_v34 = vrot.slane %v285_v31, 1 }
 0x267   :  { %v315_v35 = vadd.f32 %v314_v33, %v313_v30  ;;  %v287_v36 = vadd.f32 %v286_v34, %v285_v31 }
 0x269   :  { %426 = vpush %v287_v36  ;;  %v316_v38 = vrot.slane %v315_v35, 1 }
 0x26a   :  { %428 = vpush %v302_v37 }
 0x26b   :  { %v317_v39 = vadd.f32 %v316_v38, %v315_v35 }
 0x26d   :  { %430 = vpush %v317_v39 }
 0x29a   :  { %s427_s9 = spop %426 }
 0x29b   :  { %v289_v42 = vstv %s427_s9  ;;  %s429_s12 = spop %428 }
 0x29c   :  { %v290_v43 = vadd.f32 %v289_v42, %v277_v40  ;;  %v304_v44 = vstv %s429_s12 }
 0x29d   :  { %v305_v45 = vadd.f32 %v304_v44, %v292_v41 }
 0x29e   :  { %291 = vst.msk [vmem:[#allocation4] sm:$0x1] %vm99_vm5, %v290_v43  ;;  %s431_s4 = spop %430 }
 0x29f   :  { %306 = vst.msk [vmem:[#allocation6] sm:$0x1] %vm99_vm5, %v305_v45  ;;  %v319_v47 = vstv %s431_s4 }
 0x2a0   :  { %481 = shalt.err (!%p478_p12)
}
 0x2a1   :  { %s482_s1 = scalar_lea.hbm %s720_s6, 16 }
 0x2a2   :  { %p483_p13 = scmp.ne.s32.totalorder %s720_s6, %s482_s1  ;;  %p486_p0 = scmp.lt.u32.totalorder %s482_s1, %s720_s6 }
 0x2a4   :  { %p488_p1 = pnand %p486_p0, %p483_p13 }
 0x2a6   :  { %491 = shalt.err (!%p488_p1)
}
 0x2a7   :  { %341 = dma.vmem_to_hbm [thread:$0]  %s339_s30, 16, %s720_s6, [#allocation5]   ;;  %v320_v48 = vadd.f32 %v319_v47, %v307_v46 }
 0x2a8   :  { %s492_s22 = scalar_lea.vmem %s659_s11, 16  ;;  %s496_s23 = scalar_lea.vmem %s659_s11, 32 }
 0x2a9   :  { %p493_p2 = scmp.ne.s32.totalorder %s659_s11, %s492_s22  ;;  %p497_p3 = scmp.lt.s32.totalorder %s659_s11, %s659_s11 }
 0x2aa   :  { %p498_p4 = scmp.lt.s32.totalorder %s496_s23, %s492_s22 }
 0x2ac   :  { %p499_p5 = por %p498_p4, %p497_p3 }
 0x2ae   :  { %p500_p6 = pnand %p499_p5, %p493_p2 }
 0x2b0   :  { %503 = shalt.err (!%p500_p6)
}
 0x2b1   :  { %s504_s26 = scalar_lea.hbm %s721_s7, 16 }
 0x2b2   :  { %p505_p7 = scmp.ne.s32.totalorder %s721_s7, %s504_s26  ;;  %p508_p8 = scmp.lt.u32.totalorder %s504_s26, %s721_s7 }
 0x2b4   :  { %p510_p9 = pnand %p508_p8, %p505_p7 }
 0x2b6   :  { %513 = shalt.err (!%p510_p9)
}
 0x2b7   :  { %351 = dma.vmem_to_hbm [thread:$0]  %s659_s11, 16, %s721_s7, [#allocation5]   ;;  %321 = vst.msk [vmem:[#allocation7] sm:$0x1] %vm99_vm5, %v320_v48 }
 0x2b8   :  { %s514_s9 = scalar_lea.vmem %s662_s13, 16  ;;  %s518_s10 = scalar_lea.vmem %s662_s13, 32 }
 0x2b9   :  { %p515_p10 = scmp.ne.s32.totalorder %s662_s13, %s514_s9  ;;  %p519_p11 = scmp.lt.s32.totalorder %s662_s13, %s662_s13 }
 0x2ba   :  { %p520_p12 = scmp.lt.s32.totalorder %s518_s10, %s514_s9 }
 0x2bc   :  { %p521_p13 = por %p520_p12, %p519_p11 }
 0x2be   :  { %p522_p0 = pnand %p521_p13, %p515_p10 }
 0x2c0   :  { %525 = shalt.err (!%p522_p0)
}
 0x2c1   :  { %s526_s4 = scalar_lea.hbm %s722_s8, 16 }
 0x2c2   :  { %p527_p1 = scmp.ne.s32.totalorder %s722_s8, %s526_s4  ;;  %p530_p2 = scmp.lt.u32.totalorder %s526_s4, %s722_s8 }
 0x2c4   :  { %p532_p3 = pnand %p530_p2, %p527_p1 }
 0x2c6   :  { %535 = shalt.err (!%p532_p3)
}
 0x2c7   :  { %361 = dma.vmem_to_hbm [thread:$0]  %s662_s13, 16, %s722_s8, [#allocation8]  }
 0x2c8   :  { %536 = dma.done.wait [#allocation3], 16  }
 0x2c9   :  { %537 = vsyncadd [#allocation3], 4294967280 }
 0x2ca   :  { %538 = dma.done.wait [#allocation5], 32  }
 0x2cb   :  { %539 = vsyncadd [#allocation5], 4294967264 }
 0x2cc   :  { %540 = dma.done.wait [#allocation8], 16  }
 0x2cd   :  { %541 = vsyncadd [#allocation8], 4294967280 }
 0x2ce   :  { %374 = vsyncpa [#allocation3], 1 }
 0x2cf   :  { %375 = vsyncpa [#allocation5], 1 }
 0x2d0   :  { %376 = vsyncpa [#allocation8], 1 }

</bundles_post_ra>
